<compile_context>
chip_gen: v6e
topology: v6e:2x2x1
jax: 0.10.0
libtpu: 0.0.40
codegen_flags: <defaults>
</compile_context>

<pallas_src>
import functools

import jax
import jax.numpy as jnp
from jax.experimental import pallas as pl
from jax.experimental.pallas import tpu as pltpu

_MIB = 1024 * 1024


def _round_up(n, m):
    return ((n + m - 1) // m) * m


def _vmem_budget_bytes():
    """Per-generation VMEM budget: physical capacity minus ~20% headroom."""
    try:
        cap = int(pltpu.get_tpu_info().vmem_capacity_bytes)
    except Exception:  # info unavailable -> assume the smallest part (v7x, 64 MiB/TC)
        cap = 64 * _MIB
    return max(32 * _MIB, int(cap * 0.8))


def _choose_batch_tile(B, tb_req, per_row_bytes, tile_budget):
    """Largest multiple-of-8 batch tile that fits `tile_budget`, keeps >= 2
    grid steps when the batch allows (v7x megacore), and preferably divides
    round_up(B, 8) so the wrapper never has to jnp.pad x."""
    B8 = _round_up(max(B, 1), 8)
    ub = max(8, min(_round_up(tb_req, 8), B8))
    if B8 >= 16:                                   # keep >= 2 grid steps
        ub = min(ub, max(8, ((B8 // 2) // 8) * 8))
    while ub > 8 and ub * per_row_bytes > tile_budget:
        ub -= 8
    for t in range(ub, max(8, ub // 2) - 1, -8):   # prefer a divisor of B8
        if B8 % t == 0:
            return t
    return ub                                      # ragged: pad in the wrapper


# ----------------------------------------------------------------------------
# Kernels
# ----------------------------------------------------------------------------
def _resident_kernel(x_ref, w1_ref, w2_ref, bias_ref, o_ref):
    """Both (D, D) bf16 weights resident in VMEM; grid axis over batch tiles."""
    x = x_ref[...]                                             # (tb, D) f32
    h = jnp.dot(x.astype(jnp.bfloat16), w1_ref[...],
                preferred_element_type=jnp.float32) + bias_ref[0:1, :]
    h = jnp.maximum(h, 0.0)                                    # ReLU (dropout = id)
    h = jnp.dot(h.astype(jnp.bfloat16), w2_ref[...],
                preferred_element_type=jnp.float32) + bias_ref[1:2, :]
    o_ref[...] = jnp.maximum(x + h, 0.0).astype(o_ref.dtype)   # residual + ReLU


def _ktiled_kernel(x_ref, w1_ref, w2_ref, b1_ref, b2_ref, o_ref, acc_ref):
    """Hidden-dimension-tiled plan: stream W1 (D, tn) / W2 (tn, D) chunks and
    accumulate into an f32 VMEM scratch (for D too large to keep resident)."""
    n = pl.program_id(1)

    @pl.when(n == 0)
    def _():
        acc_ref[...] = jnp.zeros_like(acc_ref)

    x = x_ref[...]                                             # (tb, D) f32
    h = jnp.dot(x.astype(jnp.bfloat16), w1_ref[...],
                preferred_element_type=jnp.float32) + b1_ref[...]
    h = jnp.maximum(h, 0.0)                                    # ReLU (dropout = id)
    acc_ref[...] += jnp.dot(h.astype(jnp.bfloat16), w2_ref[...],
                            preferred_element_type=jnp.float32)

    @pl.when(n == pl.num_programs(1) - 1)
    def _():
        o_ref[...] = jnp.maximum(x + acc_ref[...] + b2_ref[...],
                                 0.0).astype(o_ref.dtype)


# ----------------------------------------------------------------------------
# Wrapper
# ----------------------------------------------------------------------------
def _build_and_run(x, params, *, tb, force_hidden_tile, tn_req,
                   single_buffer_invariants):
    B, D = x.shape
    assert D % 128 == 0, "feature dim must be a multiple of 128 (lane-dense stores)"

    w1, w2, bias = params["w1"], params["w2"], params["bias"]
    budget = _vmem_budget_bytes()
    inv_bufs = 1 if single_buffer_invariants else 2
    inv_kwargs = ({"pipeline_mode": pl.Buffered(1)}
                  if single_buffer_invariants else {})

    # Footprints.  Double-buffering of the streamed x/out tiles is counted
    # once; in-kernel temporaries (f32 h, bf16 casts of x and h, residual)
    # get ~4 * tb * D * 4 bytes of headroom.
    bias_bytes = inv_bufs * 8 * D * 4                  # (2, D) padded to 8 sublanes
    w_res_bytes = inv_bufs * 2 * D * D * 2             # two resident bf16 (D, D)
    per_row_resident = (2 + 2) * D * 4 + 4 * D * 4     # x + out (2-buf) + temps
    per_row_tiled = per_row_resident + D * 4           # + f32 accumulator

    use_tiled = force_hidden_tile or (
        w_res_bytes + bias_bytes + 8 * per_row_resident > budget)

    if not use_tiled:
        tb_eff = _choose_batch_tile(B, tb, per_row_resident,
                                    budget - w_res_bytes - bias_bytes)
        Bp = _round_up(B, tb_eff)
        x_p = x if Bp == B else jnp.pad(x, ((0, Bp - B), (0, 0)))
        grid = (Bp // tb_eff,)
        in_specs = [
            pl.BlockSpec((tb_eff, D), lambda i: (i, 0)),              # x tile
            pl.BlockSpec((D, D), lambda i: (0, 0), **inv_kwargs),     # W1' (invariant)
            pl.BlockSpec((D, D), lambda i: (0, 0), **inv_kwargs),     # W2' (invariant)
            pl.BlockSpec((2, D), lambda i: (0, 0), **inv_kwargs),     # bias slab
        ]
        out_specs = pl.BlockSpec((tb_eff, D), lambda i: (i, 0))
        operands = (x_p, w1, w2, bias)
        kernel = _resident_kernel
        scratch = []
        dims = ("parallel",)
    else:
        # Hidden chunk width: multiple of 128 dividing D, with chunk DMA
        # footprint (two double-buffered bf16 tiles = 8*D*tn B) <= ~1/3 budget.
        if tn_req is not None:
            assert D % tn_req == 0 and tn_req % 128 == 0
            tn = tn_req
        else:
            tn, t = 128, 128
            w_tile_budget = max(2 * _MIB, budget // 3)
            while t <= D:
                if D % t == 0 and 8 * D * t <= w_tile_budget:
                    tn = t
                t += 128
        w_tile_bytes = 2 * 2 * D * tn * 2
        tb_eff = _choose_batch_tile(B, tb, per_row_tiled,
                                    budget - w_tile_bytes - bias_bytes)
        Bp = _round_up(B, tb_eff)
        x_p = x if Bp == B else jnp.pad(x, ((0, Bp - B), (0, 0)))
        grid = (Bp // tb_eff, D // tn)
        in_specs = [
            pl.BlockSpec((tb_eff, D), lambda i, n: (i, 0)),            # x (inv. over n)
            pl.BlockSpec((D, tn), lambda i, n: (0, n)),                # W1' chunk
            pl.BlockSpec((tn, D), lambda i, n: (n, 0)),                # W2' chunk
            pl.BlockSpec((1, tn), lambda i, n: (0, n)),                # b1' chunk
            pl.BlockSpec((1, D), lambda i, n: (0, 0), **inv_kwargs),   # b2' (invariant)
        ]
        out_specs = pl.BlockSpec((tb_eff, D), lambda i, n: (i, 0))
        operands = (x_p, w1, w2, bias[0:1, :], bias[1:2, :])
        kernel = _ktiled_kernel
        scratch = [pltpu.VMEM((tb_eff, D), jnp.float32)]
        dims = ("parallel", "arbitrary")

    out = pl.pallas_call(
        kernel,
        out_shape=jax.ShapeDtypeStruct((Bp, D), x.dtype),
        grid_spec=pltpu.PrefetchScalarGridSpec(
            num_scalar_prefetch=0,
            grid=grid,
            in_specs=in_specs,
            out_specs=out_specs,
            scratch_shapes=scratch),
        compiler_params=pltpu.CompilerParams(
            dimension_semantics=dims,
            vmem_limit_bytes=int(budget)),
    )(*operands)

    out = jax.block_until_ready(out)   # surface compile/run errors right here
    return out if Bp == B else out[:B]


def mlp_resnet_block(x, params, *, tb=512, force_hidden_tile=False, tn=None):
    """Fused eval-mode MLPResNetBlock.  x: (B, D) f32, params from fold_params()."""
    try:
        return _build_and_run(x, params, tb=tb, force_hidden_tile=force_hidden_tile,
                              tn_req=tn, single_buffer_invariants=True)
    except Exception:
        # pl.Buffered(1) single-buffering of grid-invariant operands is a pure
        # VMEM optimization; if this JAX/Mosaic build rejects it, fall back to
        # the default double-buffered plan (same numerics).
        return _build_and_run(x, params, tb=tb, force_hidden_tile=force_hidden_tile,
                              tn_req=tn, single_buffer_invariants=False)


# ----------------------------------------------------------------------------
# Parameters and references
# ----------------------------------------------------------------------------
def init_raw_params(key, dim):
    """Deterministic params matching MLPResNetBlock.__init__, with non-trivial
    BatchNorm affine + running stats so the eval-mode BN fold is exercised."""
    ks = jax.random.split(key, 12)
    bound = 1.0 / jnp.sqrt(dim)
    # nn.Linear weights are (out, in); stored pre-transposed as (in, out).
    w1 = jax.random.uniform(ks[0], (dim, dim), jnp.float32, -bound, bound)
    b1 = jax.random.uniform(ks[1], (dim,), jnp.float32, -bound, bound)
    w2 = jax.random.uniform(ks[2], (dim, dim), jnp.float32, -bound, bound)
    b2 = jax.random.uniform(ks[3], (dim,), jnp.float32, -bound, bound)
    g1 = 1.0 + 0.1 * jax.random.normal(ks[4], (dim,), jnp.float32)
    be1 = 0.1 * jax.random.normal(ks[5], (dim,), jnp.float32)
    m1 = 0.1 * jax.random.normal(ks[6], (dim,), jnp.float32)
    v1 = 1.0 + 0.2 * jax.random.uniform(ks[7], (dim,), jnp.float32)
    g2 = 1.0 + 0.1 * jax.random.normal(ks[8], (dim,), jnp.float32)
    be2 = 0.1 * jax.random.normal(ks[9], (dim,), jnp.float32)
    m2 = 0.1 * jax.random.normal(ks[10], (dim,), jnp.float32)
    v2 = 1.0 + 0.2 * jax.random.uniform(ks[11], (dim,), jnp.float32)
    return dict(w1_t=w1.T, b1=b1, g1=g1, be1=be1, m1=m1, v1=v1,
                w2_t=w2.T, b2=b2, g2=g2, be2=be2, m2=m2, v2=v2)


def fold_params(raw, eps=1e-5):
    """One-time fold of eval-mode BatchNorm into the Linear weights/biases."""
    s1 = raw["g1"] * jax.lax.rsqrt(raw["v1"] + eps)
    s2 = raw["g2"] * jax.lax.rsqrt(raw["v2"] + eps)
    w1f = (raw["w1_t"] * s1[None, :]).astype(jnp.bfloat16)     # (D_in, D_out)
    w2f = (raw["w2_t"] * s2[None, :]).astype(jnp.bfloat16)
    b1f = (raw["b1"] - raw["m1"]) * s1 + raw["be1"]
    b2f = (raw["b2"] - raw["m2"]) * s2 + raw["be2"]
    bias = jnp.stack([b1f, b2f], axis=0).astype(jnp.float32)   # (2, D)
    return dict(w1=w1f, w2=w2f, bias=bias)


def reference_folded(x, p):
    """Plain-JAX emulation of the exact kernel math (bf16 MXU, f32 acc)."""
    h = jnp.dot(x.astype(jnp.bfloat16), p["w1"],
                preferred_element_type=jnp.float32) + p["bias"][0]
    h = jnp.maximum(h, 0.0)
    h = jnp.dot(h.astype(jnp.bfloat16), p["w2"],
                preferred_element_type=jnp.float32) + p["bias"][1]
    return jnp.maximum(x + h, 0.0)


def reference_f32(x, raw):
    """Full-f32 PyTorch eval-mode semantics of MLPResNetBlock."""
    def bn(h, g, be, m, v):
        return (h - m) * (g * jax.lax.rsqrt(v + 1e-5)) + be
    h = x @ raw["w1_t"] + raw["b1"]
    h = jnp.maximum(bn(h, raw["g1"], raw["be1"], raw["m1"], raw["v1"]), 0.0)
    h = h @ raw["w2_t"] + raw["b2"]
    h = bn(h, raw["g2"], raw["be2"], raw["m2"], raw["v2"])
    return jnp.maximum(x + h, 0.0)


if __name__ == "__main__":
    key = jax.random.PRNGKey(0)
    kx1, kp1, kx2, kp2 = jax.random.split(key, 4)

    # --- Test 1: resident-weights path (typical small feature dim) ----------
    B1, D1 = 256, 128
    x1 = jax.random.normal(kx1, (B1, D1), jnp.float32)
    raw1 = init_raw_params(kp1, D1)
    p1 = fold_params(raw1)
    out1 = jax.block_until_ready(mlp_resnet_block(x1, p1))
    assert out1.shape == (B1, D1)
    assert jnp.allclose(out1, reference_folded(x1, p1), atol=1e-3, rtol=1e-3), \
        "resident path: mismatch vs folded bf16 reference"
    assert jnp.allclose(out1, reference_f32(x1, raw1), atol=5e-2, rtol=5e-2), \
        "resident path: mismatch vs f32 module reference"

    # --- Test 2: hidden-dimension-tiled path (large-D / v7x plan), forced at
    #     a small shape so the accumulator + epilogue are exercised here -----
    B2, D2 = 64, 256
    x2 = jax.random.normal(kx2, (B2, D2), jnp.float32)
    raw2 = init_raw_params(kp2, D2)
    p2 = fold_params(raw2)
    out2 = jax.block_until_ready(
        mlp_resnet_block(x2, p2, force_hidden_tile=True, tn=128))
    assert out2.shape == (B2, D2)
    assert jnp.allclose(out2, reference_folded(x2, p2), atol=1e-3, rtol=1e-3), \
        "tiled path: mismatch vs folded bf16 reference"
    assert jnp.allclose(out2, reference_f32(x2, raw2), atol=5e-2, rtol=5e-2), \
        "tiled path: mismatch vs f32 module reference"

    print("KERNEL_OK")
</pallas_src>

<mosaic_0001>
module attributes {stable_mosaic.version = 11 : i64} {
  func.func @_resident_kernel(%arg0: i32, %arg1: memref<128x128xf32, #tpu.memory_space<vmem>>, %arg2: memref<128x128xbf16, #tpu.memory_space<vmem>>, %arg3: memref<128x128xbf16, #tpu.memory_space<vmem>>, %arg4: memref<2x128xf32, #tpu.memory_space<vmem>>, %arg5: memref<128x128xf32, #tpu.memory_space<vmem>>) attributes {dimension_semantics = [#tpu.dimension_semantics<parallel>], iteration_bounds = array<i64: 2>, scalar_prefetch = 0 : i64, scratch_operands = 0 : i64, tpu.core_type = #tpu.core_type<tc>, window_params = [{transform_indices = @transform_0, window_bounds = array<i64: 128, 128>}, {pipeline_mode = #tpu.pipeline_mode<synchronous>, transform_indices = @transform_1, window_bounds = array<i64: 128, 128>}, {pipeline_mode = #tpu.pipeline_mode<synchronous>, transform_indices = @transform_2, window_bounds = array<i64: 128, 128>}, {pipeline_mode = #tpu.pipeline_mode<synchronous>, transform_indices = @transform_3, window_bounds = array<i64: 2, 128>}, {transform_indices = @transform_4, window_bounds = array<i64: 128, 128>}]} {
    %c0 = arith.constant 0 : index
    %c0_0 = arith.constant 0 : index
    %0 = vector.load %arg1[%c0, %c0_0] : memref<128x128xf32, #tpu.memory_space<vmem>>, vector<128x128xf32>
    %1 = arith.truncf %0 : vector<128x128xf32> to vector<128x128xbf16>
    %c0_1 = arith.constant 0 : index
    %c0_2 = arith.constant 0 : index
    %2 = vector.load %arg2[%c0_1, %c0_2] : memref<128x128xbf16, #tpu.memory_space<vmem>>, vector<128x128xbf16>
    %cst = arith.constant dense<0.000000e+00> : vector<128x128xf32>
    %3 = tpu.matmul %1, %2, %cst {dimension_numbers = #tpu.dot_dimension_numbers<[1], [0], [0], [1], [0, 0, 1, 1], [], []>} : vector<128x128xbf16>, vector<128x128xbf16>, vector<128x128xf32> -> vector<128x128xf32>
    %c0_3 = arith.constant 0 : index
    %c0_4 = arith.constant 0 : index
    %4 = vector.load %arg4[%c0_3, %c0_4] : memref<2x128xf32, #tpu.memory_space<vmem>>, vector<1x128xf32>
    %5 = vector.broadcast %4 : vector<1x128xf32> to vector<128x128xf32>
    %6 = arith.addf %3, %5 : vector<128x128xf32>
    %cst_5 = arith.constant 0.000000e+00 : f32
    %7 = vector.broadcast %cst_5 : f32 to vector<128x128xf32>
    %8 = arith.maximumf %6, %7 : vector<128x128xf32>
    %9 = arith.truncf %8 : vector<128x128xf32> to vector<128x128xbf16>
    %c0_6 = arith.constant 0 : index
    %c0_7 = arith.constant 0 : index
    %10 = vector.load %arg3[%c0_6, %c0_7] : memref<128x128xbf16, #tpu.memory_space<vmem>>, vector<128x128xbf16>
    %cst_8 = arith.constant dense<0.000000e+00> : vector<128x128xf32>
    %11 = tpu.matmul %9, %10, %cst_8 {dimension_numbers = #tpu.dot_dimension_numbers<[1], [0], [0], [1], [0, 0, 1, 1], [], []>} : vector<128x128xbf16>, vector<128x128xbf16>, vector<128x128xf32> -> vector<128x128xf32>
    %c1 = arith.constant 1 : index
    %c0_9 = arith.constant 0 : index
    %12 = vector.load %arg4[%c1, %c0_9] : memref<2x128xf32, #tpu.memory_space<vmem>>, vector<1x128xf32>
    %13 = vector.broadcast %12 : vector<1x128xf32> to vector<128x128xf32>
    %14 = arith.addf %11, %13 : vector<128x128xf32>
    %15 = arith.addf %0, %14 : vector<128x128xf32>
    %cst_10 = arith.constant 0.000000e+00 : f32
    %16 = vector.broadcast %cst_10 : f32 to vector<128x128xf32>
    %17 = arith.maximumf %15, %16 : vector<128x128xf32>
    %c0_11 = arith.constant 0 : index
    %c0_12 = arith.constant 0 : index
    %18 = vector.load %arg5[%c0_11, %c0_12] : memref<128x128xf32, #tpu.memory_space<vmem>>, vector<128x128xf32>
    tpu.vector_store %arg5[%c0_11, %c0_12], %17 {strides = array<i32>} : memref<128x128xf32, #tpu.memory_space<vmem>>, vector<128x128xf32>,
    return
  }
  func.func @transform_0(%arg0: i32) -> (i32, i32) {
    %c0_i32 = arith.constant 0 : i32
    %c0_i32_0 = arith.constant 0 : i32
    return %arg0, %c0_i32 : i32, i32
  }
  func.func @transform_1(%arg0: i32) -> (i32, i32) {
    %c0_i32 = arith.constant 0 : i32
    %c0_i32_0 = arith.constant 0 : i32
    %c0_i32_1 = arith.constant 0 : i32
    return %c0_i32, %c0_i32_0 : i32, i32
  }
  func.func @transform_2(%arg0: i32) -> (i32, i32) {
    %c0_i32 = arith.constant 0 : i32
    %c0_i32_0 = arith.constant 0 : i32
    %c0_i32_1 = arith.constant 0 : i32
    return %c0_i32, %c0_i32_0 : i32, i32
  }
  func.func @transform_3(%arg0: i32) -> (i32, i32) {
    %c0_i32 = arith.constant 0 : i32
    %c0_i32_0 = arith.constant 0 : i32
    %c0_i32_1 = arith.constant 0 : i32
    return %c0_i32, %c0_i32_0 : i32, i32
  }
  func.func @transform_4(%arg0: i32) -> (i32, i32) {
    %c0_i32 = arith.constant 0 : i32
    %c0_i32_0 = arith.constant 0 : i32
    return %arg0, %c0_i32 : i32, i32
  }
}

module attributes {stable_mosaic.version = 11 : i64} {
  func.func @_resident_kernel(%arg0: i32, %arg1: memref<128x128xf32, #tpu.memory_space<vmem>>, %arg2: memref<128x128xbf16, #tpu.memory_space<vmem>>, %arg3: memref<128x128xbf16, #tpu.memory_space<vmem>>, %arg4: memref<2x128xf32, #tpu.memory_space<vmem>>, %arg5: memref<128x128xf32, #tpu.memory_space<vmem>>) attributes {dimension_semantics = [#tpu.dimension_semantics<parallel>], iteration_bounds = array<i64: 2>, scalar_prefetch = 0 : i64, scratch_operands = 0 : i64, tpu.core_type = #tpu.core_type<tc>, window_params = [{transform_indices = @transform_0, window_bounds = array<i64: 128, 128>}, {pipeline_mode = #tpu.pipeline_mode<synchronous>, transform_indices = @transform_1, window_bounds = array<i64: 128, 128>}, {pipeline_mode = #tpu.pipeline_mode<synchronous>, transform_indices = @transform_2, window_bounds = array<i64: 128, 128>}, {pipeline_mode = #tpu.pipeline_mode<synchronous>, transform_indices = @transform_3, window_bounds = array<i64: 2, 128>}, {transform_indices = @transform_4, window_bounds = array<i64: 128, 128>}]} {
    %c0 = arith.constant 0 : index
    %c0_0 = arith.constant 0 : index
    %0 = vector.load %arg1[%c0, %c0_0] : memref<128x128xf32, #tpu.memory_space<vmem>>, vector<128x128xf32>
    %1 = arith.truncf %0 : vector<128x128xf32> to vector<128x128xbf16>
    %c0_1 = arith.constant 0 : index
    %c0_2 = arith.constant 0 : index
    %2 = vector.load %arg2[%c0_1, %c0_2] : memref<128x128xbf16, #tpu.memory_space<vmem>>, vector<128x128xbf16>
    %cst = arith.constant dense<0.000000e+00> : vector<128x128xf32>
    %3 = tpu.matmul %1, %2, %cst {dimension_numbers = #tpu.dot_dimension_numbers<[1], [0], [0], [1], [0, 0, 1, 1], [], []>} : vector<128x128xbf16>, vector<128x128xbf16>, vector<128x128xf32> -> vector<128x128xf32>
    %c0_3 = arith.constant 0 : index
    %c0_4 = arith.constant 0 : index
    %4 = vector.load %arg4[%c0_3, %c0_4] : memref<2x128xf32, #tpu.memory_space<vmem>>, vector<1x128xf32>
    %5 = vector.broadcast %4 : vector<1x128xf32> to vector<128x128xf32>
    %6 = arith.addf %3, %5 : vector<128x128xf32>
    %cst_5 = arith.constant 0.000000e+00 : f32
    %7 = vector.broadcast %cst_5 : f32 to vector<128x128xf32>
    %8 = arith.maximumf %6, %7 : vector<128x128xf32>
    %9 = arith.truncf %8 : vector<128x128xf32> to vector<128x128xbf16>
    %c0_6 = arith.constant 0 : index
    %c0_7 = arith.constant 0 : index
    %10 = vector.load %arg3[%c0_6, %c0_7] : memref<128x128xbf16, #tpu.memory_space<vmem>>, vector<128x128xbf16>
    %cst_8 = arith.constant dense<0.000000e+00> : vector<128x128xf32>
    %11 = tpu.matmul %9, %10, %cst_8 {dimension_numbers = #tpu.dot_dimension_numbers<[1], [0], [0], [1], [0, 0, 1, 1], [], []>} : vector<128x128xbf16>, vector<128x128xbf16>, vector<128x128xf32> -> vector<128x128xf32>
    %c1 = arith.constant 1 : index
    %c0_9 = arith.constant 0 : index
    %12 = vector.load %arg4[%c1, %c0_9] : memref<2x128xf32, #tpu.memory_space<vmem>>, vector<1x128xf32>
    %13 = vector.broadcast %12 : vector<1x128xf32> to vector<128x128xf32>
    %14 = arith.addf %11, %13 : vector<128x128xf32>
    %15 = arith.addf %0, %14 : vector<128x128xf32>
    %cst_10 = arith.constant 0.000000e+00 : f32
    %16 = vector.broadcast %cst_10 : f32 to vector<128x128xf32>
    %17 = arith.maximumf %15, %16 : vector<128x128xf32>
    %c0_11 = arith.constant 0 : index
    %c0_12 = arith.constant 0 : index
    %18 = vector.load %arg5[%c0_11, %c0_12] : memref<128x128xf32, #tpu.memory_space<vmem>>, vector<128x128xf32>
    tpu.vector_store %arg5[%c0_11, %c0_12], %17 {strides = array<i32>} : memref<128x128xf32, #tpu.memory_space<vmem>>, vector<128x128xf32>,
    return
  }
  func.func @transform_0(%arg0: i32) -> (i32, i32) {
    %c0_i32 = arith.constant 0 : i32
    %c0_i32_0 = arith.constant 0 : i32
    return %arg0, %c0_i32 : i32, i32
  }
  func.func @transform_1(%arg0: i32) -> (i32, i32) {
    %c0_i32 = arith.constant 0 : i32
    %c0_i32_0 = arith.constant 0 : i32
    %c0_i32_1 = arith.constant 0 : i32
    return %c0_i32, %c0_i32_0 : i32, i32
  }
  func.func @transform_2(%arg0: i32) -> (i32, i32) {
    %c0_i32 = arith.constant 0 : i32
    %c0_i32_0 = arith.constant 0 : i32
    %c0_i32_1 = arith.constant 0 : i32
    return %c0_i32, %c0_i32_0 : i32, i32
  }
  func.func @transform_3(%arg0: i32) -> (i32, i32) {
    %c0_i32 = arith.constant 0 : i32
    %c0_i32_0 = arith.constant 0 : i32
    %c0_i32_1 = arith.constant 0 : i32
    return %c0_i32, %c0_i32_0 : i32, i32
  }
  func.func @transform_4(%arg0: i32) -> (i32, i32) {
    %c0_i32 = arith.constant 0 : i32
    %c0_i32_0 = arith.constant 0 : i32
    return %arg0, %c0_i32 : i32, i32
  }
}

</mosaic_0001>

<bundles_post_ra>
// kernel: tpu_custom_call.1
= control target key start
LH: loop header
LB: loop body
LE: loop exit
PB: predicated region body
PF: predicated region fallthrough
CT: control target
= control target key end

     0   :  { %9 = vsyncpa [#allocation3], 0  ;;  %s1507_s0 = inlined_call_operand.hbm [shape: f32[256,128], index: 0, kind: input, shape index: {}]   ;;  %s1508_s1 = inlined_call_operand.hbm [shape: bf16[128,128], index: 1, kind: input, shape index: {}]   ;;  %s1509_s2 = inlined_call_operand.hbm [shape: bf16[128,128], index: 2, kind: input, shape index: {}]   ;;  %s1510_s3 = inlined_call_operand.vmem [shape: f32[2,128], index: 3, kind: input, shape index: {}]   ;;  %s1511_s4 = inlined_call_operand.hbm [shape: f32[256,128], index: 4, kind: output, shape index: {}]  }
   0x1   :  { %11 = vsyncpa [#allocation3 + $0x1], 0 }
   0x2   :  { %12 = vsyncpa [#allocation6], 0 }
   0x3   :  { %13 = vsyncpa [#allocation4], 0 }
   0x4   :  { %15 = vsyncpa [#allocation4 + $0x1], 0  ;;  %s1190_s15 = smov 0   ;;  %s1192_s16 = smov 0  }
   0x5   :  { %s1194_s17 = smov 0   ;;  %s1196_s18 = smov 0  }
   0x6 LB: > { %s1211_s19 = sadd.s32 4294967295, %s1153_s18   ;;  %s782_s20 = sadd.s32 4294967294, %s1153_s18   ;;  %s1153_s18 = sphi %s1196_s18, %s1533_s18   ;;  %s1149_s17 = sphi %s1194_s17, %s1532_s17   ;;  %s1145_s16 = sphi %s1192_s16, %s1531_s16   ;;  %s1141_s15 = sphi %s1190_s15, %s1530_s15  }
   0x7   : > { %p41_p0 = scmp.ne.s32.totalorder %s1145_s16, %s1141_s15  ;;  %p1512_p1 = scmp.eq.s32.totalorder %s1211_s19, 0 }
   0x8   : > { %p134_p3 = scmp.eq.s32.totalorder %s782_s20, 1  ;;  %p783_p5 = scmp.ge.s32.totalorder %s1153_s18, 1 }
   0x9   : > { %p1220_p4 = por %p1512_p1, %p41_p0  ;;  %p141_p7 = scmp.lt.s32.totalorder %s1153_s18, 3 }
   0xa   : > { %p1225_p6 = por %p134_p3, %p41_p0  ;;  %s1155_s24 = smov [#allocation5]  }
   0xb   : > { %s1516_s21 = scalar_select %p1220_p4, 1, 0 }
   0xc   : > { %s1517_s22 = scalar_select %p1225_p6, 1, 0 }
   0xd   : > { %p1230_p8 = pnand %p783_p5, %p141_p7  ;;  %s153_s25 = sshll.u32 %s1155_s24, 4  ;;  %s154_s25 = int_to_ptr.vmem [resolvable:$true] %s153_s25 }
   0xe   : > { %s1156_s27 = smov [#allocation7]   ;;  %s1016_s29 = scalar_lea.vmem %s154_s25, 1024 }
   0xf   : > { %s1518_s23 = scalar_select %p1230_p8, 1, 0 }
  0x10   : > { %p928_p9 = pneg %p1230_p8  ;;  %s166_s28 = sshll.u32 %s1156_s27, 4  ;;  %s167_s28 = int_to_ptr.vmem [resolvable:$true] %s166_s28 }
  0x11   : > { %p1017_p13 = scmp.ne.s32.totalorder %s154_s25, %s1016_s29  ;;  %p1024_p5 = scmp.lt.s32.totalorder %s154_s25, %s154_s25 }
  0x12   : > { %p1239_p11 = pnand %p928_p9, %p1512_p1  ;;  %p1025_p7 = scmp.lt.s32.totalorder %s1016_s29, %s1016_s29 }
  0x14   : > { %p1007_p12 = pneg %p1239_p11  ;;  %p1026_p10 = por %p1025_p7, %p1024_p5 }
  0x16   : > { %p1019_p0 = pnand %p1017_p13, %p1007_p12 }
  0x18   : > { %p1020_p3 = pneg %p1019_p0 }
  0x1a   : > { %p1027_p9 = pnand %p1026_p10, %p1020_p3 }
  0x1c   : > { %1030 = shalt.err (!%p1027_p9)
}
  0x1d   : > { %s1157_s30 = smov 64   ;;  %s1158_s5 = smov 4  }
  0x1e   : > { %931 = dma.hbm_to_vmem [thread:$0]  (!%p1239_p11), %s1508_s1, 1024, %s154_s25, [#allocation6], %s1157_s30, %s1157_s30, %s1158_s5  }
  0x1f   : > { %s1042_s8 = scalar_lea.vmem %s167_s28, 1024  ;;  %p1050_p2 = scmp.lt.s32.totalorder %s167_s28, %s167_s28 }
  0x20   : > { %p1043_p1 = scmp.ne.s32.totalorder %s167_s28, %s1042_s8  ;;  %p1051_p6 = scmp.lt.s32.totalorder %s1042_s8, %s1042_s8 }
  0x22   : > { %p1045_p13 = pnand %p1043_p1, %p1007_p12  ;;  %p1052_p5 = por %p1051_p6, %p1050_p2 }
  0x24   : > { %p1046_p0 = pneg %p1045_p13 }
  0x26   : > { %p1053_p10 = pnand %p1052_p5, %p1046_p0 }
  0x28   : > { %1056 = shalt.err (!%p1053_p10)
}
  0x29   : > { %934 = dma.hbm_to_vmem [thread:$0]  (!%p1239_p11), %s1509_s2, 1024, %s167_s28, [#allocation6], %s1157_s30, %s1157_s30, %s1158_s5  }
  0x2a   : > { %s1262_s11 = sadd.s32 1, %s1153_s18   ;;  %s28_s12 = sadd.s32 1, %s1149_s17 }
  0x2b   : > { %s25_s13 = ssub.s32 %s1153_s18, %s1262_s11  ;;  %p35_p1 = scmp.ne.s32.totalorder %s1149_s17, %s1145_s16 }
  0x2c   : > { %p26_p2 = scmp.eq.s32.totalorder %s25_s13, 0  ;;  %p36_p6 = scmp.eq.s32.totalorder %s1153_s18, 0 }
  0x2d   : > { %p1520_p12 = scmp.eq.s32.totalorder %s1211_s19, 1  ;;  %p945_p7 = scmp.lt.s32.totalorder %s1153_s18, 2 }
  0x2e   : > { %s1278_s20 = scalar_select %p26_p2, %s1149_s17, %s28_s12  }
  0x2f   : > { %p1272_p3 = por %p1520_p12, %p35_p1  ;;  %p37_p9 = por %p36_p6, %p35_p1 }
  0x30   : > { %s183_s24 = sand.u32 1, %s1149_s17   ;;  %s818_s26 = sshll.u32 %s1153_s18, 11 }
  0x31   : > { %s1521_s14 = scalar_select %p1272_p3, 1, 0 }
  0x32   : > { %s787_s25 = sshll.u32 %s183_s24, 7  ;;  %s1285_s29 = scalar_lea.hbm %s1507_s0, %s818_s26 }
  0x33   : > { %s187_s30 = scalar_lea.vmem [#allocation2], %s787_s25  ;;  %p1289_p11 = pnand %p945_p7, %p37_p9 }
  0x34   : > { %s194_s5 = sshll.u32 %s187_s30, 4  ;;  %s1293_s7 = scalar_lea.sflag [#allocation3], %s183_s24  ;;  %s1287_s5 = int_to_ptr.vmem [resolvable:$true] %s194_s5 }
  0x35   : > { %s1057_s8 = scalar_lea.hbm %s1285_s29, 2048  ;;  %p1059_p0 = pneg %p1289_p11 }
  0x36   : > { %p1058_p13 = scmp.ne.s32.totalorder %s1285_s29, %s1057_s8  ;;  %s1062_s12 = scalar_lea.hbm %s1507_s0, 4096 }
  0x37   : > { %p1063_p1 = scmp.lt.s32.totalorder %s1285_s29, %s1507_s0  ;;  %p1064_p2 = scmp.lt.s32.totalorder %s1062_s12, %s1057_s8 }
  0x38   : > { %p1060_p5 = pnand %p1059_p0, %p1058_p13 }
  0x39   : > { %p1065_p6 = por %p1064_p2, %p1063_p1 }
  0x3a   : > { %p1061_p10 = pneg %p1060_p5 }
  0x3c   : > { %p1066_p12 = pnand %p1065_p6, %p1061_p10 }
  0x3e   : > { %1069 = shalt.err (!%p1066_p12)
}
  0x3f   : > { %s1070_s24 = scalar_lea.vmem %s1287_s5, 2048  ;;  %s1159_s26 = smov [#allocation2]  }
  0x40   : > { %p1071_p7 = scmp.ne.s32.totalorder %s1287_s5, %s1070_s24  ;;  %s1075_s27 = sshll.u32 %s1159_s26, 4  ;;  %s1076_s27 = int_to_ptr.vmem [resolvable:$false] %s1075_s27 }
  0x41   : > { %s1077_s28 = scalar_lea.vmem %s1076_s27, 4096  ;;  %p1078_p5 = scmp.lt.s32.totalorder %s1287_s5, %s1076_s27 }
  0x42   : > { %p1073_p9 = pnand %p1071_p7, %p1059_p0  ;;  %p1079_p3 = scmp.lt.s32.totalorder %s1077_s28, %s1070_s24 }
  0x44   : > { %p1074_p13 = pneg %p1073_p9  ;;  %p1080_p4 = por %p1079_p3, %p1078_p5 }
  0x46   : > { %p1081_p8 = pnand %p1080_p4, %p1074_p13 }
  0x48   : > { %1084 = shalt.err (!%p1081_p8)
}
  0x49   : > { %s1160_s30 = smov 128   ;;  %s1161_s8 = smov 8  }
  0x4a   : > { %938 = dma.hbm_to_vmem [thread:$0]  (!%p1289_p11), %s1285_s29, 2048, %s1287_s5, %s1293_s7, %s1160_s30, %s1160_s30, %s1161_s8  }
  0x4b   : > { %p1523_p0 = scmp.ne.s32.totalorder %s1518_s23, 0 }
  0x4c   : > { %s1317_s9 = sand.u32 (!%p1523_p0), 1, %s1145_s16   ;;  %p1524_p4 = scmp.ne.s32.totalorder (!%p1523_p0), %s1516_s21, 0 }
  0x4d   : > { %206 = sbr.rel (%p1523_p0) target bundleno = 568 (0x238), region = 36  ;;  %s791_s10 = sshll.u32 (!%p1523_p0), %s1317_s9, 7 }
  0x4e   : > { %s209_s12 = scalar_lea.sflag (!%p1523_p0), [#allocation3], %s1317_s9  ;;  %s1323_s13 = scalar_lea.vmem (!%p1523_p0), [#allocation2], %s791_s10 }
  0x52   : > { %1128 = dma.done.wait (%p1524_p4), %s209_s12, 2048  }
  0x53   : > { %1130 = vsyncadd (%p1524_p4), %s209_s12, 4294965248  ;;  %p1525_p8 = scmp.eq.s32.totalorder %s1211_s19, 0 }
  0x55   : > { %1132 = dma.done.wait (%p1525_p8), [#allocation6], 2048   ;;  %p1526_p3 = pmov %p1525_p8 }
  0x56   : > { %v989_v0 = vld [vmem:[#allocation5 + $0x38] sm:$0xff]   ;;  %v990_v1 = vld [vmem:[#allocation5 + $0x30] sm:$0xff]   ;;  %v991_v2 = vld [vmem:[#allocation5 + $0x28] sm:$0xff]   ;;  %s1412_s6 = scalar_lea.vmem [#allocation8], %s791_s10  ;;  %s819_s7 = sshll.u32 %s1211_s19, 11 }
  0x57   : > { %1134 = vsyncadd (%p1526_p3), [#allocation6], 4294965248  ;;  %852 = vmatprep.subr.bf16.mxu0 %v989_v0  ;;  %v992_v3 = vld [vmem:[#allocation5 + $0x20] sm:$0xff]   ;;  %v1337_v5 = vld [vmem:[%s1323_s13 + $0x8] sm:$0xff]  ;;  %s690_s25 = sshll.u32 %s1412_s6, 4  ;;  %s1460_s27 = scalar_lea.hbm %s1511_s4, %s819_s7  ;;  %s1462_s25 = int_to_ptr.vmem [resolvable:$true] %s690_s25 }
  0x58   : > { %853 = vmatpush3.bf16.msra.mxu0 %v989_v0  ;;  %v1334_v4 = vld [vmem:[%s1323_s13] sm:$0xff]  ;;  %v993_v7 = vld [vmem:[#allocation5 + $0x18] sm:$0xff]   ;;  %v998_v9 = vld [vmem:[#allocation7 + $0x30] sm:$0xff]   ;;  %s677_s28 = scalar_lea.sflag [#allocation4], %s1317_s9  ;;  %s1085_s19 = scalar_lea.vmem %s1462_s25, 2048 }
  0x59   : > { %854 = vmatprep.subr.bf16.mxu0 %v990_v1  ;;  %v264_v6 = vpack.c.bf16 %v1337_v5, %v1334_v4  ;;  %v997_v8 = vld [vmem:[#allocation7 + $0x38] sm:$0xff]   ;;  %v994_v10 = vld [vmem:[#allocation5 + $0x10] sm:$0xff]   ;;  %v999_v11 = vld [vmem:[#allocation7 + $0x28] sm:$0xff]   ;;  %p1086_p11 = scmp.ne.s32.totalorder %s1462_s25, %s1085_s19  ;;  %p1527_p10 = scmp.ne.s32.totalorder %s1521_s14, 0 }
  0x5a   : > { %884 = vmatprep.subr.bf16.mxu1 %v997_v8  ;;  %v995_v12 = vld [vmem:[#allocation5 + $0x8] sm:$0xff]   ;;  %v1000_v13 = vld [vmem:[#allocation7 + $0x20] sm:$0xff]   ;;  %v1001_v15 = vld [vmem:[#allocation7 + $0x18] sm:$0xff]   ;;  %s1162_s30 = smov [#allocation8]  }
  0x5b   : > { %868 = vmatprep.mubr.bf16.mxu0 %v264_v6  ;;  %885 = vmatpush3.bf16.msra.mxu1 %v997_v8  ;;  %v996_v14 = vld [vmem:[#allocation5] sm:$0xff]   ;;  %v1342_v16 = vld [vmem:[%s1323_s13 + $0x10] sm:$0xff]  ;;  %v1345_v17 = vld [vmem:[%s1323_s13 + $0x18] sm:$0xff]  ;;  %p1087_p1 = pnand %p1086_p11, %p1527_p10  ;;  %s1089_s8 = sshll.u32 %s1162_s30, 4  ;;  %s1090_s8 = int_to_ptr.vmem [resolvable:$false] %s1089_s8 }
  0x5c   : > { %855 = vmatpush3.bf16.msra.mxu0 %v990_v1  ;;  %886 = vmatprep.subr.bf16.mxu1 %v998_v9  ;;  %v1348_v18 = vld [vmem:[%s1323_s13 + $0x20] sm:$0xff]  ;;  %v1351_v19 = vld [vmem:[%s1323_s13 + $0x28] sm:$0xff]  ;;  %v265_v20 = vpack.c.bf16 %v1345_v17, %v1342_v16  ;;  %v1358_v22 = vld [vmem:[%s1323_s13 + $0x30] sm:$0xff]  ;;  %s1091_s10 = scalar_lea.vmem %s1090_s8, 4096  ;;  %p1092_p6 = scmp.lt.s32.totalorder %s1462_s25, %s1090_s8 }
  0x5d   : > { %856 = vmatprep.subr.bf16.mxu0 %v991_v2  ;;  %v266_v21 = vpack.c.bf16 %v1351_v19, %v1348_v18  ;;  %v1361_v23 = vld [vmem:[%s1323_s13 + $0x38] sm:$0xff]  ;;  %v1364_v24 = vld [vmem:[%s1323_s13 + $0x40] sm:$0xff]  ;;  %v1367_v25 = vld [vmem:[%s1323_s13 + $0x48] sm:$0xff]  ;;  %p1088_p2 = pneg %p1087_p1  ;;  %p1093_p12 = scmp.lt.s32.totalorder %s1091_s10, %s1085_s19 }
  0x5e   : > { %v267_v26 = vpack.c.bf16 %v1361_v23, %v1358_v22  ;;  %v268_v27 = vpack.c.bf16 %v1367_v25, %v1364_v24  ;;  %v1374_v28 = vld [vmem:[%s1323_s13 + $0x50] sm:$0xff]  ;;  %v1377_v29 = vld [vmem:[%s1323_s13 + $0x58] sm:$0xff]  ;;  %v1380_v30 = vld [vmem:[%s1323_s13 + $0x60] sm:$0xff] }
  0x5f   : > { %887 = vmatpush3.bf16.msra.mxu1 %v998_v9  ;;  %v1383_v31 = vld [vmem:[%s1323_s13 + $0x68] sm:$0xff]  ;;  %v269_v32 = vpack.c.bf16 %v1377_v29, %v1374_v28  ;;  %v1390_v34 = vld [vmem:[%s1323_s13 + $0x70] sm:$0xff]  ;;  %v1393_v35 = vld [vmem:[%s1323_s13 + $0x78] sm:$0xff]  ;;  %p1094_p7 = por %p1093_p12, %p1092_p6 }
  0x60   : > { %857 = vmatpush3.bf16.msra.mxu0 %v991_v2  ;;  %888 = vmatprep.subr.bf16.mxu1 %v999_v11  ;;  %v270_v33 = vpack.c.bf16 %v1383_v31, %v1380_v30  ;;  %v271_v36 = vpack.c.bf16 %v1393_v35, %v1390_v34  ;;  %v1002_v37 = vld [vmem:[#allocation7 + $0x10] sm:$0xff]   ;;  %v1003_v38 = vld [vmem:[#allocation7 + $0x8] sm:$0xff]   ;;  %v1004_v39 = vld [vmem:[#allocation7] sm:$0xff]  }
  0x61   : > { %858 = vmatprep.subr.bf16.mxu0 %v992_v3  ;;  %v795_v42 = vld [vmem:[%s1510_s3] ss:$0 sm:$0xff]  ;;  %p1095_p9 = pnand %p1094_p7, %p1088_p2 }
  0x63   : > { %889 = vmatpush3.bf16.msra.mxu1 %v999_v11 }
  0x64   : > { %859 = vmatpush3.bf16.msra.mxu0 %v992_v3  ;;  %890 = vmatprep.subr.bf16.mxu1 %v1000_v13 }
  0x65   : > { %860 = vmatprep.subr.bf16.mxu0 %v993_v7 }
  0x67   : > { %891 = vmatpush3.bf16.msra.mxu1 %v1000_v13 }
  0x68   : > { %861 = vmatpush3.bf16.msra.mxu0 %v993_v7  ;;  %892 = vmatprep.subr.bf16.mxu1 %v1001_v15 }
  0x69   : > { %862 = vmatprep.subr.bf16.mxu0 %v994_v10 }
  0x6b   : > { %893 = vmatpush3.bf16.msra.mxu1 %v1001_v15 }
  0x6c   : > { %863 = vmatpush3.bf16.msra.mxu0 %v994_v10  ;;  %894 = vmatprep.subr.bf16.mxu1 %v1002_v37 }
  0x6d   : > { %864 = vmatprep.subr.bf16.mxu0 %v995_v12 }
  0x6f   : > { %895 = vmatpush3.bf16.msra.mxu1 %v1002_v37 }
  0x70   : > { %865 = vmatpush3.bf16.msra.mxu0 %v995_v12  ;;  %896 = vmatprep.subr.bf16.mxu1 %v1003_v38 }
  0x71   : > { %866 = vmatprep.subr.bf16.mxu0 %v996_v14 }
  0x73   : > { %897 = vmatpush3.bf16.msra.mxu1 %v1003_v38 }
  0x74   : > { %867 = vmatpush3.bf16.msra.mxu0 %v996_v14  ;;  %898 = vmatprep.subr.bf16.mxu1 %v1004_v39 }
  0x77   : > { %869 = vmatmul.mubr.bf16.vlgmr.msra.gmra.mxu0 %v265_v20  ;;  %899 = vmatpush3.bf16.msra.mxu1 %v1004_v39 }
  0x78   : > { %872 = vmatprep.mubr.bf16.mxu0 %v266_v21 }
  0x7f   : > { %873 = vmatmul.mubr.bf16.gmra.mxu0 %v267_v26 }
  0x80   : > { %876 = vmatprep.mubr.bf16.mxu0 %v268_v27 }
  0x87   : > { %877 = vmatmul.mubr.bf16.gmra.mxu0 %v269_v32 }
  0x88   : > { %880 = vmatprep.mubr.bf16.mxu0 %v270_v33 }
  0x8f   : > { %881 = vmatmul.mubr.bf16.gmra.mxu0 %v271_v36 }
 0x137   : > { %v870_v40 = vpop.f32.mrf.mxu0 }
 0x138   : > { %v384_v46 = vadd.f32 %v870_v40, %v795_v42 }
 0x139   : > { %v375_v41 = vpop.f32.mrf.mxu0 }
 0x13a   : > { %v376_v44 = vadd.f32 %v795_v42, %v375_v41  ;;  %v440_v53 = vmax.f32 %v384_v46, 0.0 }
 0x13b   : > { %v871_v43 = vpop.f32.mrf.mxu0 }
 0x13c   : > { %v387_v45 = vadd.f32 %v871_v43, %v795_v42  ;;  %v438_v51 = vmax.f32 %v376_v44, 0.0 }
 0x13d   : > { %v378_v47 = vpop.f32.mrf.mxu0 }
 0x13e   : > { %v379_v48 = vadd.f32 %v795_v42, %v378_v47  ;;  %v441_v49 = vmax.f32 %v387_v45, 0.0 }
 0x13f   : > { %v874_v50 = vpop.f32.mrf.mxu0 }
 0x140   : > { %v439_v52 = vmax.f32 %v379_v48, 0.0  ;;  %v455_v56 = vpack.c.bf16 %v441_v49, %v440_v53  ;;  %v400_v60 = vadd.f32 %v874_v50, %v795_v42  ;;  %v1403_v50 = vld [vmem:[%s1510_s3 + $0x1] ss:$0 sm:$0xff] }
 0x141   : > { %v391_v54 = vpop.f32.mrf.mxu0 }
 0x142   : > { %v454_v55 = vpack.c.bf16 %v439_v52, %v438_v51  ;;  %v392_v58 = vadd.f32 %v795_v42, %v391_v54  ;;  %v444_v3 = vmax.f32 %v400_v60, 0.0 }
 0x143   : > { %v875_v57 = vpop.f32.mrf.mxu0 }
 0x144   : > { %v403_v59 = vadd.f32 %v875_v57, %v795_v42  ;;  %900 = vmatprep.mubr.bf16.mxu1 %v454_v55  ;;  %v442_v1 = vmax.f32 %v392_v58, 0.0 }
 0x145   : > { %v394_v61 = vpop.f32.mrf.mxu0  ;;  %901 = vmatmul.mubr.bf16.vlgmr.msra.gmra.mxu1 %v455_v56 }
 0x146   : > { %v395_v62 = vadd.f32 %v795_v42, %v394_v61  ;;  %v445_v63 = vmax.f32 %v403_v59, 0.0 }
 0x147   : > { %v878_v0 = vpop.f32.mrf.mxu0 }
 0x148   : > { %v443_v2 = vmax.f32 %v395_v62, 0.0  ;;  %v457_v8 = vpack.c.bf16 %v445_v63, %v444_v3  ;;  %v416_v12 = vadd.f32 %v878_v0, %v795_v42 }
 0x149   : > { %v407_v6 = vpop.f32.mrf.mxu0 }
 0x14a   : > { %v456_v7 = vpack.c.bf16 %v443_v2, %v442_v1  ;;  %v408_v10 = vadd.f32 %v795_v42, %v407_v6  ;;  %v448_v27 = vmax.f32 %v416_v12, 0.0 }
 0x14b   : > { %v879_v9 = vpop.f32.mrf.mxu0 }
 0x14c   : > { %v419_v11 = vadd.f32 %v879_v9, %v795_v42  ;;  %904 = vmatprep.mubr.bf16.mxu1 %v456_v7  ;;  %v446_v21 = vmax.f32 %v408_v10, 0.0 }
 0x14d   : > { %v410_v13 = vpop.f32.mrf.mxu0  ;;  %905 = vmatmul.mubr.bf16.gmra.mxu1 %v457_v8 }
 0x14e   : > { %v411_v14 = vadd.f32 %v795_v42, %v410_v13  ;;  %v449_v15 = vmax.f32 %v419_v11, 0.0 }
 0x14f   : > { %v882_v20 = vpop.f32.mrf.mxu0 }
 0x150   : > { %v447_v26 = vmax.f32 %v411_v14, 0.0  ;;  %v459_v36 = vpack.c.bf16 %v449_v15, %v448_v27  ;;  %v432_v40 = vadd.f32 %v882_v20, %v795_v42 }
 0x151   : > { %v423_v32 = vpop.f32.mrf.mxu0 }
 0x152   : > { %v458_v33 = vpack.c.bf16 %v447_v26, %v446_v21  ;;  %v424_v38 = vadd.f32 %v795_v42, %v423_v32  ;;  %v452_v47 = vmax.f32 %v432_v40, 0.0 }
 0x153   : > { %v883_v37 = vpop.f32.mrf.mxu0 }
 0x154   : > { %v435_v39 = vadd.f32 %v883_v37, %v795_v42  ;;  %908 = vmatprep.mubr.bf16.mxu1 %v458_v33  ;;  %v450_v45 = vmax.f32 %v424_v38, 0.0 }
 0x155   : > { %v426_v41 = vpop.f32.mrf.mxu0  ;;  %909 = vmatmul.mubr.bf16.gmra.mxu1 %v459_v36 }
 0x156   : > { %v427_v43 = vadd.f32 %v795_v42, %v426_v41  ;;  %v453_v44 = vmax.f32 %v435_v39, 0.0 }
 0x158   : > { %v451_v46 = vmax.f32 %v427_v43, 0.0  ;;  %v461_v49 = vpack.c.bf16 %v453_v44, %v452_v47 }
 0x15a   : > { %v460_v48 = vpack.c.bf16 %v451_v46, %v450_v45 }
 0x15c   : > { %912 = vmatprep.mubr.bf16.mxu1 %v460_v48 }
 0x15d   : > { %913 = vmatmul.mubr.bf16.gmra.mxu1 %v461_v49 }
 0x205   : > { %v902_v51 = vpop.f32.mrf.mxu1 }
 0x206   : > { %v574_v52 = vadd.f32 %v902_v51, %v1403_v50 }
 0x207   : > { %v565_v53 = vpop.f32.mrf.mxu1 }
 0x208   : > { %v630_v42 = vadd.f32 %v574_v52, %v1342_v16  ;;  %v566_v54 = vadd.f32 %v1403_v50, %v565_v53 }
 0x209   : > { %v903_v55 = vpop.f32.mrf.mxu1 }
 0x20a   : > { %v646_v56 = vmax.f32 %v630_v42, 0.0  ;;  %v628_v57 = vadd.f32 %v566_v54, %v1334_v4  ;;  %v577_v58 = vadd.f32 %v903_v55, %v1403_v50 }
 0x20b   : > { %v568_v59 = vpop.f32.mrf.mxu1 }
 0x20c   : > { %662 = vst [vmem:[%s1412_s6 + $0x10] sm:$0xff] %v646_v56  ;;  %v644_v60 = vmax.f32 %v628_v57, 0.0  ;;  %v631_v16 = vadd.f32 %v577_v58, %v1345_v17  ;;  %v569_v61 = vadd.f32 %v1403_v50, %v568_v59 }
 0x20d   : > { %v906_v62 = vpop.f32.mrf.mxu1 }
 0x20e   : > { %660 = vst [vmem:[%s1412_s6] sm:$0xff] %v644_v60  ;;  %v647_v4 = vmax.f32 %v631_v16, 0.0  ;;  %v629_v63 = vadd.f32 %v569_v61, %v1337_v5  ;;  %v590_v0 = vadd.f32 %v906_v62, %v1403_v50 }
 0x20f   : > { %v581_v1 = vpop.f32.mrf.mxu1 }
 0x210   : > { %663 = vst [vmem:[%s1412_s6 + $0x18] sm:$0xff] %v647_v4  ;;  %v645_v2 = vmax.f32 %v629_v63, 0.0  ;;  %v634_v3 = vadd.f32 %v590_v0, %v1358_v22  ;;  %v582_v6 = vadd.f32 %v1403_v50, %v581_v1 }
 0x211   : > { %v907_v7 = vpop.f32.mrf.mxu1 }
 0x212   : > { %661 = vst [vmem:[%s1412_s6 + $0x8] sm:$0xff] %v645_v2  ;;  %v650_v17 = vmax.f32 %v634_v3, 0.0  ;;  %v632_v8 = vadd.f32 %v582_v6, %v1348_v18  ;;  %v593_v9 = vadd.f32 %v907_v7, %v1403_v50 }
 0x213   : > { %v584_v10 = vpop.f32.mrf.mxu1 }
 0x214   : > { %666 = vst [vmem:[%s1412_s6 + $0x30] sm:$0xff] %v650_v17  ;;  %v648_v5 = vmax.f32 %v632_v8, 0.0  ;;  %v635_v11 = vadd.f32 %v593_v9, %v1361_v23  ;;  %v585_v12 = vadd.f32 %v1403_v50, %v584_v10 }
 0x215   : > { %v910_v13 = vpop.f32.mrf.mxu1 }
 0x216   : > { %664 = vst [vmem:[%s1412_s6 + $0x20] sm:$0xff] %v648_v5  ;;  %v651_v22 = vmax.f32 %v635_v11, 0.0  ;;  %v633_v14 = vadd.f32 %v585_v12, %v1351_v19  ;;  %v606_v15 = vadd.f32 %v910_v13, %v1403_v50 }
 0x217   : > { %v597_v20 = vpop.f32.mrf.mxu1 }
 0x218   : > { %667 = vst [vmem:[%s1412_s6 + $0x38] sm:$0xff] %v651_v22  ;;  %v649_v18 = vmax.f32 %v633_v14, 0.0  ;;  %v638_v21 = vadd.f32 %v606_v15, %v1374_v28  ;;  %v598_v26 = vadd.f32 %v1403_v50, %v597_v20 }
 0x219   : > { %v911_v27 = vpop.f32.mrf.mxu1 }
 0x21a   : > { %665 = vst [vmem:[%s1412_s6 + $0x28] sm:$0xff] %v649_v18  ;;  %v654_v23 = vmax.f32 %v638_v21, 0.0  ;;  %v636_v32 = vadd.f32 %v598_v26, %v1364_v24  ;;  %v609_v33 = vadd.f32 %v911_v27, %v1403_v50 }
 0x21b   : > { %v600_v36 = vpop.f32.mrf.mxu1 }
 0x21c   : > { %670 = vst [vmem:[%s1412_s6 + $0x50] sm:$0xff] %v654_v23  ;;  %v652_v19 = vmax.f32 %v636_v32, 0.0  ;;  %v639_v37 = vadd.f32 %v609_v33, %v1377_v29  ;;  %v601_v38 = vadd.f32 %v1403_v50, %v600_v36 }
 0x21d   : > { %v914_v39 = vpop.f32.mrf.mxu1 }
 0x21e   : > { %668 = vst [vmem:[%s1412_s6 + $0x40] sm:$0xff] %v652_v19  ;;  %v655_v28 = vmax.f32 %v639_v37, 0.0  ;;  %v637_v40 = vadd.f32 %v601_v38, %v1367_v25  ;;  %v622_v41 = vadd.f32 %v914_v39, %v1403_v50 }
 0x21f   : > { %v613_v24 = vpop.f32.mrf.mxu1 }
 0x220   : > { %671 = vst [vmem:[%s1412_s6 + $0x58] sm:$0xff] %v655_v28  ;;  %v653_v43 = vmax.f32 %v637_v40, 0.0  ;;  %v642_v44 = vadd.f32 %v622_v41, %v1390_v34  ;;  %v614_v29 = vadd.f32 %v1403_v50, %v613_v24 }
 0x221   : > { %v915_v45 = vpop.f32.mrf.mxu1 }
 0x222   : > { %669 = vst [vmem:[%s1412_s6 + $0x48] sm:$0xff] %v653_v43  ;;  %v658_v46 = vmax.f32 %v642_v44, 0.0  ;;  %v640_v47 = vadd.f32 %v614_v29, %v1380_v30  ;;  %v625_v25 = vadd.f32 %v915_v45, %v1403_v50 }
 0x223   : > { %v616_v48 = vpop.f32.mrf.mxu1 }
 0x224   : > { %674 = vst [vmem:[%s1412_s6 + $0x70] sm:$0xff] %v658_v46  ;;  %v656_v49 = vmax.f32 %v640_v47, 0.0  ;;  %v643_v51 = vadd.f32 %v625_v25, %v1393_v35  ;;  %v617_v34 = vadd.f32 %v1403_v50, %v616_v48 }
 0x226   : > { %672 = vst [vmem:[%s1412_s6 + $0x60] sm:$0xff] %v656_v49  ;;  %v659_v52 = vmax.f32 %v643_v51, 0.0  ;;  %v641_v53 = vadd.f32 %v617_v34, %v1383_v31 }
 0x228   : > { %675 = vst [vmem:[%s1412_s6 + $0x78] sm:$0xff] %v659_v52  ;;  %v657_v30 = vmax.f32 %v641_v53, 0.0 }
 0x22a   : > { %673 = vst [vmem:[%s1412_s6 + $0x68] sm:$0xff] %v657_v30 }
 0x22b   : > { %1098 = shalt.err (!%p1095_p9)
}
 0x22c   : > { %s1099_s12 = scalar_lea.hbm %s1460_s27, 2048  ;;  %s1103_s23 = scalar_lea.hbm %s1511_s4, 4096 }
 0x22d   : > { %p1100_p13 = scmp.ne.s32.totalorder %s1460_s27, %s1099_s12  ;;  %p1104_p4 = scmp.lt.s32.totalorder %s1460_s27, %s1511_s4 }
 0x22e   : > { %p1105_p8 = scmp.lt.s32.totalorder %s1103_s23, %s1099_s12 }
 0x22f   : > { %p1101_p5 = pnand %p1100_p13, %p1527_p10 }
 0x230   : > { %p1106_p3 = por %p1105_p8, %p1104_p4 }
 0x231   : > { %p1102_p0 = pneg %p1101_p5 }
 0x233   : > { %p1107_p11 = pnand %p1106_p3, %p1102_p0 }
 0x235   : > { %1110 = shalt.err (!%p1107_p11)
}
 0x236   : > { %s1163_s6 = smov 128   ;;  %s1164_s7 = smov 8  }
 0x237   : > { %926 = dma.vmem_to_hbm [thread:$0]  (%p1527_p10), %s1462_s25, 2048, %s1460_s27, %s677_s28, %s1163_s6, %s1163_s6, %s1164_s7  }
 0x238 PF: > { %s705_s24 = sand.u32 1, %s1141_s15   ;;  %p1528_p1 = scmp.ne.s32.totalorder %s1517_s22, 0 }
 0x239   : > { %p1529_p2 = scmp.ge.s32.totalorder %s1153_s18, 2  ;;  %s706_s26 = scalar_lea.sflag [#allocation4], %s705_s24 }
 0x23b   : > { %p940_p6 = pnand %p1529_p2, %p1528_p1 }
 0x23d   : > { %p941_p12 = pneg %p940_p6 }
 0x23f   : > { %1136 = dma.done.wait (%p941_p12), %s706_s26, 2048  }
 0x240   : > { %1138 = vsyncadd (%p941_p12), %s706_s26, 4294965248  ;;  %p18_p7 = scmp.ge.s32.totalorder %s1262_s11, 4   ;;  %s1530_s15 = smov %s1145_s16 }
 0x241   : > { %s1531_s16 = smov %s1149_s17  ;;  %s1532_s17 = smov %s1278_s20 }
 0x242   : > { %s1533_s18 = smov %s1262_s11  ;;  %20 = sbr.rel (!%p18_p7) target bundleno = 6 (0x6), region = 89 }
 0x247   :  { %711 = vsyncpa [#allocation3], 1 }
 0x248   :  { %713 = vsyncpa [#allocation3 + $0x1], 1 }
 0x249   :  { %714 = vsyncpa [#allocation6], 1 }
 0x24a   :  { %715 = vsyncpa [#allocation4], 1 }
 0x24b   :  { %717 = vsyncpa [#allocation4 + $0x1], 1 }

// kernel: tpu_custom_call.1
= control target key start
LH: loop header
LB: loop body
LE: loop exit
PB: predicated region body
PF: predicated region fallthrough
CT: control target
= control target key end

     0   :  { %9 = vsyncpa [#allocation3], 0  ;;  %s1507_s0 = inlined_call_operand.hbm [shape: f32[256,128], index: 0, kind: input, shape index: {}]   ;;  %s1508_s1 = inlined_call_operand.hbm [shape: bf16[128,128], index: 1, kind: input, shape index: {}]   ;;  %s1509_s2 = inlined_call_operand.hbm [shape: bf16[128,128], index: 2, kind: input, shape index: {}]   ;;  %s1510_s3 = inlined_call_operand.vmem [shape: f32[2,128], index: 3, kind: input, shape index: {}]   ;;  %s1511_s4 = inlined_call_operand.hbm [shape: f32[256,128], index: 4, kind: output, shape index: {}]  }
   0x1   :  { %11 = vsyncpa [#allocation3 + $0x1], 0 }
   0x2   :  { %12 = vsyncpa [#allocation6], 0 }
   0x3   :  { %13 = vsyncpa [#allocation4], 0 }
   0x4   :  { %15 = vsyncpa [#allocation4 + $0x1], 0  ;;  %s1190_s15 = smov 0   ;;  %s1192_s16 = smov 0  }
   0x5   :  { %s1194_s17 = smov 0   ;;  %s1196_s18 = smov 0  }
   0x6 LB: > { %s1211_s19 = sadd.s32 4294967295, %s1153_s18   ;;  %s782_s20 = sadd.s32 4294967294, %s1153_s18   ;;  %s1153_s18 = sphi %s1196_s18, %s1533_s18   ;;  %s1149_s17 = sphi %s1194_s17, %s1532_s17   ;;  %s1145_s16 = sphi %s1192_s16, %s1531_s16   ;;  %s1141_s15 = sphi %s1190_s15, %s1530_s15  }
   0x7   : > { %p41_p0 = scmp.ne.s32.totalorder %s1145_s16, %s1141_s15  ;;  %p1512_p1 = scmp.eq.s32.totalorder %s1211_s19, 0 }
   0x8   : > { %p134_p3 = scmp.eq.s32.totalorder %s782_s20, 1  ;;  %p783_p5 = scmp.ge.s32.totalorder %s1153_s18, 1 }
   0x9   : > { %p1220_p4 = por %p1512_p1, %p41_p0  ;;  %p141_p7 = scmp.lt.s32.totalorder %s1153_s18, 3 }
   0xa   : > { %p1225_p6 = por %p134_p3, %p41_p0  ;;  %s1155_s24 = smov [#allocation5]  }
   0xb   : > { %s1516_s21 = scalar_select %p1220_p4, 1, 0 }
   0xc   : > { %s1517_s22 = scalar_select %p1225_p6, 1, 0 }
   0xd   : > { %p1230_p8 = pnand %p783_p5, %p141_p7  ;;  %s153_s25 = sshll.u32 %s1155_s24, 4  ;;  %s154_s25 = int_to_ptr.vmem [resolvable:$true] %s153_s25 }
   0xe   : > { %s1156_s27 = smov [#allocation7]   ;;  %s1016_s29 = scalar_lea.vmem %s154_s25, 1024 }
   0xf   : > { %s1518_s23 = scalar_select %p1230_p8, 1, 0 }
  0x10   : > { %p928_p9 = pneg %p1230_p8  ;;  %s166_s28 = sshll.u32 %s1156_s27, 4  ;;  %s167_s28 = int_to_ptr.vmem [resolvable:$true] %s166_s28 }
  0x11   : > { %p1017_p13 = scmp.ne.s32.totalorder %s154_s25, %s1016_s29  ;;  %p1024_p5 = scmp.lt.s32.totalorder %s154_s25, %s154_s25 }
  0x12   : > { %p1239_p11 = pnand %p928_p9, %p1512_p1  ;;  %p1025_p7 = scmp.lt.s32.totalorder %s1016_s29, %s1016_s29 }
  0x14   : > { %p1007_p12 = pneg %p1239_p11  ;;  %p1026_p10 = por %p1025_p7, %p1024_p5 }
  0x16   : > { %p1019_p0 = pnand %p1017_p13, %p1007_p12 }
  0x18   : > { %p1020_p3 = pneg %p1019_p0 }
  0x1a   : > { %p1027_p9 = pnand %p1026_p10, %p1020_p3 }
  0x1c   : > { %1030 = shalt.err (!%p1027_p9)
}
  0x1d   : > { %s1157_s30 = smov 64   ;;  %s1158_s5 = smov 4  }
  0x1e   : > { %931 = dma.hbm_to_vmem [thread:$0]  (!%p1239_p11), %s1508_s1, 1024, %s154_s25, [#allocation6], %s1157_s30, %s1157_s30, %s1158_s5  }
  0x1f   : > { %s1042_s8 = scalar_lea.vmem %s167_s28, 1024  ;;  %p1050_p2 = scmp.lt.s32.totalorder %s167_s28, %s167_s28 }
  0x20   : > { %p1043_p1 = scmp.ne.s32.totalorder %s167_s28, %s1042_s8  ;;  %p1051_p6 = scmp.lt.s32.totalorder %s1042_s8, %s1042_s8 }
  0x22   : > { %p1045_p13 = pnand %p1043_p1, %p1007_p12  ;;  %p1052_p5 = por %p1051_p6, %p1050_p2 }
  0x24   : > { %p1046_p0 = pneg %p1045_p13 }
  0x26   : > { %p1053_p10 = pnand %p1052_p5, %p1046_p0 }
  0x28   : > { %1056 = shalt.err (!%p1053_p10)
}
  0x29   : > { %934 = dma.hbm_to_vmem [thread:$0]  (!%p1239_p11), %s1509_s2, 1024, %s167_s28, [#allocation6], %s1157_s30, %s1157_s30, %s1158_s5  }
  0x2a   : > { %s1262_s11 = sadd.s32 1, %s1153_s18   ;;  %s28_s12 = sadd.s32 1, %s1149_s17 }
  0x2b   : > { %s25_s13 = ssub.s32 %s1153_s18, %s1262_s11  ;;  %p35_p1 = scmp.ne.s32.totalorder %s1149_s17, %s1145_s16 }
  0x2c   : > { %p26_p2 = scmp.eq.s32.totalorder %s25_s13, 0  ;;  %p36_p6 = scmp.eq.s32.totalorder %s1153_s18, 0 }
  0x2d   : > { %p1520_p12 = scmp.eq.s32.totalorder %s1211_s19, 1  ;;  %p945_p7 = scmp.lt.s32.totalorder %s1153_s18, 2 }
  0x2e   : > { %s1278_s20 = scalar_select %p26_p2, %s1149_s17, %s28_s12  }
  0x2f   : > { %p1272_p3 = por %p1520_p12, %p35_p1  ;;  %p37_p9 = por %p36_p6, %p35_p1 }
  0x30   : > { %s183_s24 = sand.u32 1, %s1149_s17   ;;  %s818_s26 = sshll.u32 %s1153_s18, 11 }
  0x31   : > { %s1521_s14 = scalar_select %p1272_p3, 1, 0 }
  0x32   : > { %s787_s25 = sshll.u32 %s183_s24, 7  ;;  %s1285_s29 = scalar_lea.hbm %s1507_s0, %s818_s26 }
  0x33   : > { %s187_s30 = scalar_lea.vmem [#allocation2], %s787_s25  ;;  %p1289_p11 = pnand %p945_p7, %p37_p9 }
  0x34   : > { %s194_s5 = sshll.u32 %s187_s30, 4  ;;  %s1293_s7 = scalar_lea.sflag [#allocation3], %s183_s24  ;;  %s1287_s5 = int_to_ptr.vmem [resolvable:$true] %s194_s5 }
  0x35   : > { %s1057_s8 = scalar_lea.hbm %s1285_s29, 2048  ;;  %p1059_p0 = pneg %p1289_p11 }
  0x36   : > { %p1058_p13 = scmp.ne.s32.totalorder %s1285_s29, %s1057_s8  ;;  %s1062_s12 = scalar_lea.hbm %s1507_s0, 4096 }
  0x37   : > { %p1063_p1 = scmp.lt.s32.totalorder %s1285_s29, %s1507_s0  ;;  %p1064_p2 = scmp.lt.s32.totalorder %s1062_s12, %s1057_s8 }
  0x38   : > { %p1060_p5 = pnand %p1059_p0, %p1058_p13 }
  0x39   : > { %p1065_p6 = por %p1064_p2, %p1063_p1 }
  0x3a   : > { %p1061_p10 = pneg %p1060_p5 }
  0x3c   : > { %p1066_p12 = pnand %p1065_p6, %p1061_p10 }
  0x3e   : > { %1069 = shalt.err (!%p1066_p12)
}
  0x3f   : > { %s1070_s24 = scalar_lea.vmem %s1287_s5, 2048  ;;  %s1159_s26 = smov [#allocation2]  }
  0x40   : > { %p1071_p7 = scmp.ne.s32.totalorder %s1287_s5, %s1070_s24  ;;  %s1075_s27 = sshll.u32 %s1159_s26, 4  ;;  %s1076_s27 = int_to_ptr.vmem [resolvable:$false] %s1075_s27 }
  0x41   : > { %s1077_s28 = scalar_lea.vmem %s1076_s27, 4096  ;;  %p1078_p5 = scmp.lt.s32.totalorder %s1287_s5, %s1076_s27 }
  0x42   : > { %p1073_p9 = pnand %p1071_p7, %p1059_p0  ;;  %p1079_p3 = scmp.lt.s32.totalorder %s1077_s28, %s1070_s24 }
  0x44   : > { %p1074_p13 = pneg %p1073_p9  ;;  %p1080_p4 = por %p1079_p3, %p1078_p5 }
  0x46   : > { %p1081_p8 = pnand %p1080_p4, %p1074_p13 }
  0x48   : > { %1084 = shalt.err (!%p1081_p8)
}
  0x49   : > { %s1160_s30 = smov 128   ;;  %s1161_s8 = smov 8  }
  0x4a   : > { %938 = dma.hbm_to_vmem [thread:$0]  (!%p1289_p11), %s1285_s29, 2048, %s1287_s5, %s1293_s7, %s1160_s30, %s1160_s30, %s1161_s8  }
  0x4b   : > { %p1523_p0 = scmp.ne.s32.totalorder %s1518_s23, 0 }
  0x4c   : > { %s1317_s9 = sand.u32 (!%p1523_p0), 1, %s1145_s16   ;;  %p1524_p4 = scmp.ne.s32.totalorder (!%p1523_p0), %s1516_s21, 0 }
  0x4d   : > { %206 = sbr.rel (%p1523_p0) target bundleno = 568 (0x238), region = 36  ;;  %s791_s10 = sshll.u32 (!%p1523_p0), %s1317_s9, 7 }
  0x4e   : > { %s209_s12 = scalar_lea.sflag (!%p1523_p0), [#allocation3], %s1317_s9  ;;  %s1323_s13 = scalar_lea.vmem (!%p1523_p0), [#allocation2], %s791_s10 }
  0x52   : > { %1128 = dma.done.wait (%p1524_p4), %s209_s12, 2048  }
  0x53   : > { %1130 = vsyncadd (%p1524_p4), %s209_s12, 4294965248  ;;  %p1525_p8 = scmp.eq.s32.totalorder %s1211_s19, 0 }
  0x55   : > { %1132 = dma.done.wait (%p1525_p8), [#allocation6], 2048   ;;  %p1526_p3 = pmov %p1525_p8 }
  0x56   : > { %v989_v0 = vld [vmem:[#allocation5 + $0x38] sm:$0xff]   ;;  %v990_v1 = vld [vmem:[#allocation5 + $0x30] sm:$0xff]   ;;  %v991_v2 = vld [vmem:[#allocation5 + $0x28] sm:$0xff]   ;;  %s1412_s6 = scalar_lea.vmem [#allocation8], %s791_s10  ;;  %s819_s7 = sshll.u32 %s1211_s19, 11 }
  0x57   : > { %1134 = vsyncadd (%p1526_p3), [#allocation6], 4294965248  ;;  %852 = vmatprep.subr.bf16.mxu0 %v989_v0  ;;  %v992_v3 = vld [vmem:[#allocation5 + $0x20] sm:$0xff]   ;;  %v1337_v5 = vld [vmem:[%s1323_s13 + $0x8] sm:$0xff]  ;;  %s690_s25 = sshll.u32 %s1412_s6, 4  ;;  %s1460_s27 = scalar_lea.hbm %s1511_s4, %s819_s7  ;;  %s1462_s25 = int_to_ptr.vmem [resolvable:$true] %s690_s25 }
  0x58   : > { %853 = vmatpush3.bf16.msra.mxu0 %v989_v0  ;;  %v1334_v4 = vld [vmem:[%s1323_s13] sm:$0xff]  ;;  %v993_v7 = vld [vmem:[#allocation5 + $0x18] sm:$0xff]   ;;  %v998_v9 = vld [vmem:[#allocation7 + $0x30] sm:$0xff]   ;;  %s677_s28 = scalar_lea.sflag [#allocation4], %s1317_s9  ;;  %s1085_s19 = scalar_lea.vmem %s1462_s25, 2048 }
  0x59   : > { %854 = vmatprep.subr.bf16.mxu0 %v990_v1  ;;  %v264_v6 = vpack.c.bf16 %v1337_v5, %v1334_v4  ;;  %v997_v8 = vld [vmem:[#allocation7 + $0x38] sm:$0xff]   ;;  %v994_v10 = vld [vmem:[#allocation5 + $0x10] sm:$0xff]   ;;  %v999_v11 = vld [vmem:[#allocation7 + $0x28] sm:$0xff]   ;;  %p1086_p11 = scmp.ne.s32.totalorder %s1462_s25, %s1085_s19  ;;  %p1527_p10 = scmp.ne.s32.totalorder %s1521_s14, 0 }
  0x5a   : > { %884 = vmatprep.subr.bf16.mxu1 %v997_v8  ;;  %v995_v12 = vld [vmem:[#allocation5 + $0x8] sm:$0xff]   ;;  %v1000_v13 = vld [vmem:[#allocation7 + $0x20] sm:$0xff]   ;;  %v1001_v15 = vld [vmem:[#allocation7 + $0x18] sm:$0xff]   ;;  %s1162_s30 = smov [#allocation8]  }
  0x5b   : > { %868 = vmatprep.mubr.bf16.mxu0 %v264_v6  ;;  %885 = vmatpush3.bf16.msra.mxu1 %v997_v8  ;;  %v996_v14 = vld [vmem:[#allocation5] sm:$0xff]   ;;  %v1342_v16 = vld [vmem:[%s1323_s13 + $0x10] sm:$0xff]  ;;  %v1345_v17 = vld [vmem:[%s1323_s13 + $0x18] sm:$0xff]  ;;  %p1087_p1 = pnand %p1086_p11, %p1527_p10  ;;  %s1089_s8 = sshll.u32 %s1162_s30, 4  ;;  %s1090_s8 = int_to_ptr.vmem [resolvable:$false] %s1089_s8 }
  0x5c   : > { %855 = vmatpush3.bf16.msra.mxu0 %v990_v1  ;;  %886 = vmatprep.subr.bf16.mxu1 %v998_v9  ;;  %v1348_v18 = vld [vmem:[%s1323_s13 + $0x20] sm:$0xff]  ;;  %v1351_v19 = vld [vmem:[%s1323_s13 + $0x28] sm:$0xff]  ;;  %v265_v20 = vpack.c.bf16 %v1345_v17, %v1342_v16  ;;  %v1358_v22 = vld [vmem:[%s1323_s13 + $0x30] sm:$0xff]  ;;  %s1091_s10 = scalar_lea.vmem %s1090_s8, 4096  ;;  %p1092_p6 = scmp.lt.s32.totalorder %s1462_s25, %s1090_s8 }
  0x5d   : > { %856 = vmatprep.subr.bf16.mxu0 %v991_v2  ;;  %v266_v21 = vpack.c.bf16 %v1351_v19, %v1348_v18  ;;  %v1361_v23 = vld [vmem:[%s1323_s13 + $0x38] sm:$0xff]  ;;  %v1364_v24 = vld [vmem:[%s1323_s13 + $0x40] sm:$0xff]  ;;  %v1367_v25 = vld [vmem:[%s1323_s13 + $0x48] sm:$0xff]  ;;  %p1088_p2 = pneg %p1087_p1  ;;  %p1093_p12 = scmp.lt.s32.totalorder %s1091_s10, %s1085_s19 }
  0x5e   : > { %v267_v26 = vpack.c.bf16 %v1361_v23, %v1358_v22  ;;  %v268_v27 = vpack.c.bf16 %v1367_v25, %v1364_v24  ;;  %v1374_v28 = vld [vmem:[%s1323_s13 + $0x50] sm:$0xff]  ;;  %v1377_v29 = vld [vmem:[%s1323_s13 + $0x58] sm:$0xff]  ;;  %v1380_v30 = vld [vmem:[%s1323_s13 + $0x60] sm:$0xff] }
  0x5f   : > { %887 = vmatpush3.bf16.msra.mxu1 %v998_v9  ;;  %v1383_v31 = vld [vmem:[%s1323_s13 + $0x68] sm:$0xff]  ;;  %v269_v32 = vpack.c.bf16 %v1377_v29, %v1374_v28  ;;  %v1390_v34 = vld [vmem:[%s1323_s13 + $0x70] sm:$0xff]  ;;  %v1393_v35 = vld [vmem:[%s1323_s13 + $0x78] sm:$0xff]  ;;  %p1094_p7 = por %p1093_p12, %p1092_p6 }
  0x60   : > { %857 = vmatpush3.bf16.msra.mxu0 %v991_v2  ;;  %888 = vmatprep.subr.bf16.mxu1 %v999_v11  ;;  %v270_v33 = vpack.c.bf16 %v1383_v31, %v1380_v30  ;;  %v271_v36 = vpack.c.bf16 %v1393_v35, %v1390_v34  ;;  %v1002_v37 = vld [vmem:[#allocation7 + $0x10] sm:$0xff]   ;;  %v1003_v38 = vld [vmem:[#allocation7 + $0x8] sm:$0xff]   ;;  %v1004_v39 = vld [vmem:[#allocation7] sm:$0xff]  }
  0x61   : > { %858 = vmatprep.subr.bf16.mxu0 %v992_v3  ;;  %v795_v42 = vld [vmem:[%s1510_s3] ss:$0 sm:$0xff]  ;;  %p1095_p9 = pnand %p1094_p7, %p1088_p2 }
  0x63   : > { %889 = vmatpush3.bf16.msra.mxu1 %v999_v11 }
  0x64   : > { %859 = vmatpush3.bf16.msra.mxu0 %v992_v3  ;;  %890 = vmatprep.subr.bf16.mxu1 %v1000_v13 }
  0x65   : > { %860 = vmatprep.subr.bf16.mxu0 %v993_v7 }
  0x67   : > { %891 = vmatpush3.bf16.msra.mxu1 %v1000_v13 }
  0x68   : > { %861 = vmatpush3.bf16.msra.mxu0 %v993_v7  ;;  %892 = vmatprep.subr.bf16.mxu1 %v1001_v15 }
  0x69   : > { %862 = vmatprep.subr.bf16.mxu0 %v994_v10 }
  0x6b   : > { %893 = vmatpush3.bf16.msra.mxu1 %v1001_v15 }
  0x6c   : > { %863 = vmatpush3.bf16.msra.mxu0 %v994_v10  ;;  %894 = vmatprep.subr.bf16.mxu1 %v1002_v37 }
  0x6d   : > { %864 = vmatprep.subr.bf16.mxu0 %v995_v12 }
  0x6f   : > { %895 = vmatpush3.bf16.msra.mxu1 %v1002_v37 }
  0x70   : > { %865 = vmatpush3.bf16.msra.mxu0 %v995_v12  ;;  %896 = vmatprep.subr.bf16.mxu1 %v1003_v38 }
  0x71   : > { %866 = vmatprep.subr.bf16.mxu0 %v996_v14 }
  0x73   : > { %897 = vmatpush3.bf16.msra.mxu1 %v1003_v38 }
  0x74   : > { %867 = vmatpush3.bf16.msra.mxu0 %v996_v14  ;;  %898 = vmatprep.subr.bf16.mxu1 %v1004_v39 }
  0x77   : > { %869 = vmatmul.mubr.bf16.vlgmr.msra.gmra.mxu0 %v265_v20  ;;  %899 = vmatpush3.bf16.msra.mxu1 %v1004_v39 }
  0x78   : > { %872 = vmatprep.mubr.bf16.mxu0 %v266_v21 }
  0x7f   : > { %873 = vmatmul.mubr.bf16.gmra.mxu0 %v267_v26 }
  0x80   : > { %876 = vmatprep.mubr.bf16.mxu0 %v268_v27 }
  0x87   : > { %877 = vmatmul.mubr.bf16.gmra.mxu0 %v269_v32 }
  0x88   : > { %880 = vmatprep.mubr.bf16.mxu0 %v270_v33 }
  0x8f   : > { %881 = vmatmul.mubr.bf16.gmra.mxu0 %v271_v36 }
 0x137   : > { %v870_v40 = vpop.f32.mrf.mxu0 }
 0x138   : > { %v384_v46 = vadd.f32 %v870_v40, %v795_v42 }
 0x139   : > { %v375_v41 = vpop.f32.mrf.mxu0 }
 0x13a   : > { %v376_v44 = vadd.f32 %v795_v42, %v375_v41  ;;  %v440_v53 = vmax.f32 %v384_v46, 0.0 }
 0x13b   : > { %v871_v43 = vpop.f32.mrf.mxu0 }
 0x13c   : > { %v387_v45 = vadd.f32 %v871_v43, %v795_v42  ;;  %v438_v51 = vmax.f32 %v376_v44, 0.0 }
 0x13d   : > { %v378_v47 = vpop.f32.mrf.mxu0 }
 0x13e   : > { %v379_v48 = vadd.f32 %v795_v42, %v378_v47  ;;  %v441_v49 = vmax.f32 %v387_v45, 0.0 }
 0x13f   : > { %v874_v50 = vpop.f32.mrf.mxu0 }
 0x140   : > { %v439_v52 = vmax.f32 %v379_v48, 0.0  ;;  %v455_v56 = vpack.c.bf16 %v441_v49, %v440_v53  ;;  %v400_v60 = vadd.f32 %v874_v50, %v795_v42  ;;  %v1403_v50 = vld [vmem:[%s1510_s3 + $0x1] ss:$0 sm:$0xff] }
 0x141   : > { %v391_v54 = vpop.f32.mrf.mxu0 }
 0x142   : > { %v454_v55 = vpack.c.bf16 %v439_v52, %v438_v51  ;;  %v392_v58 = vadd.f32 %v795_v42, %v391_v54  ;;  %v444_v3 = vmax.f32 %v400_v60, 0.0 }
 0x143   : > { %v875_v57 = vpop.f32.mrf.mxu0 }
 0x144   : > { %v403_v59 = vadd.f32 %v875_v57, %v795_v42  ;;  %900 = vmatprep.mubr.bf16.mxu1 %v454_v55  ;;  %v442_v1 = vmax.f32 %v392_v58, 0.0 }
 0x145   : > { %v394_v61 = vpop.f32.mrf.mxu0  ;;  %901 = vmatmul.mubr.bf16.vlgmr.msra.gmra.mxu1 %v455_v56 }
 0x146   : > { %v395_v62 = vadd.f32 %v795_v42, %v394_v61  ;;  %v445_v63 = vmax.f32 %v403_v59, 0.0 }
 0x147   : > { %v878_v0 = vpop.f32.mrf.mxu0 }
 0x148   : > { %v443_v2 = vmax.f32 %v395_v62, 0.0  ;;  %v457_v8 = vpack.c.bf16 %v445_v63, %v444_v3  ;;  %v416_v12 = vadd.f32 %v878_v0, %v795_v42 }
 0x149   : > { %v407_v6 = vpop.f32.mrf.mxu0 }
 0x14a   : > { %v456_v7 = vpack.c.bf16 %v443_v2, %v442_v1  ;;  %v408_v10 = vadd.f32 %v795_v42, %v407_v6  ;;  %v448_v27 = vmax.f32 %v416_v12, 0.0 }
 0x14b   : > { %v879_v9 = vpop.f32.mrf.mxu0 }
 0x14c   : > { %v419_v11 = vadd.f32 %v879_v9, %v795_v42  ;;  %904 = vmatprep.mubr.bf16.mxu1 %v456_v7  ;;  %v446_v21 = vmax.f32 %v408_v10, 0.0 }
 0x14d   : > { %v410_v13 = vpop.f32.mrf.mxu0  ;;  %905 = vmatmul.mubr.bf16.gmra.mxu1 %v457_v8 }
 0x14e   : > { %v411_v14 = vadd.f32 %v795_v42, %v410_v13  ;;  %v449_v15 = vmax.f32 %v419_v11, 0.0 }
 0x14f   : > { %v882_v20 = vpop.f32.mrf.mxu0 }
 0x150   : > { %v447_v26 = vmax.f32 %v411_v14, 0.0  ;;  %v459_v36 = vpack.c.bf16 %v449_v15, %v448_v27  ;;  %v432_v40 = vadd.f32 %v882_v20, %v795_v42 }
 0x151   : > { %v423_v32 = vpop.f32.mrf.mxu0 }
 0x152   : > { %v458_v33 = vpack.c.bf16 %v447_v26, %v446_v21  ;;  %v424_v38 = vadd.f32 %v795_v42, %v423_v32  ;;  %v452_v47 = vmax.f32 %v432_v40, 0.0 }
 0x153   : > { %v883_v37 = vpop.f32.mrf.mxu0 }
 0x154   : > { %v435_v39 = vadd.f32 %v883_v37, %v795_v42  ;;  %908 = vmatprep.mubr.bf16.mxu1 %v458_v33  ;;  %v450_v45 = vmax.f32 %v424_v38, 0.0 }
 0x155   : > { %v426_v41 = vpop.f32.mrf.mxu0  ;;  %909 = vmatmul.mubr.bf16.gmra.mxu1 %v459_v36 }
 0x156   : > { %v427_v43 = vadd.f32 %v795_v42, %v426_v41  ;;  %v453_v44 = vmax.f32 %v435_v39, 0.0 }
 0x158   : > { %v451_v46 = vmax.f32 %v427_v43, 0.0  ;;  %v461_v49 = vpack.c.bf16 %v453_v44, %v452_v47 }
 0x15a   : > { %v460_v48 = vpack.c.bf16 %v451_v46, %v450_v45 }
 0x15c   : > { %912 = vmatprep.mubr.bf16.mxu1 %v460_v48 }
 0x15d   : > { %913 = vmatmul.mubr.bf16.gmra.mxu1 %v461_v49 }
 0x205   : > { %v902_v51 = vpop.f32.mrf.mxu1 }
 0x206   : > { %v574_v52 = vadd.f32 %v902_v51, %v1403_v50 }
 0x207   : > { %v565_v53 = vpop.f32.mrf.mxu1 }
 0x208   : > { %v630_v42 = vadd.f32 %v574_v52, %v1342_v16  ;;  %v566_v54 = vadd.f32 %v1403_v50, %v565_v53 }
 0x209   : > { %v903_v55 = vpop.f32.mrf.mxu1 }
 0x20a   : > { %v646_v56 = vmax.f32 %v630_v42, 0.0  ;;  %v628_v57 = vadd.f32 %v566_v54, %v1334_v4  ;;  %v577_v58 = vadd.f32 %v903_v55, %v1403_v50 }
 0x20b   : > { %v568_v59 = vpop.f32.mrf.mxu1 }
 0x20c   : > { %662 = vst [vmem:[%s1412_s6 + $0x10] sm:$0xff] %v646_v56  ;;  %v644_v60 = vmax.f32 %v628_v57, 0.0  ;;  %v631_v16 = vadd.f32 %v577_v58, %v1345_v17  ;;  %v569_v61 = vadd.f32 %v1403_v50, %v568_v59 }
 0x20d   : > { %v906_v62 = vpop.f32.mrf.mxu1 }
 0x20e   : > { %660 = vst [vmem:[%s1412_s6] sm:$0xff] %v644_v60  ;;  %v647_v4 = vmax.f32 %v631_v16, 0.0  ;;  %v629_v63 = vadd.f32 %v569_v61, %v1337_v5  ;;  %v590_v0 = vadd.f32 %v906_v62, %v1403_v50 }
 0x20f   : > { %v581_v1 = vpop.f32.mrf.mxu1 }
 0x210   : > { %663 = vst [vmem:[%s1412_s6 + $0x18] sm:$0xff] %v647_v4  ;;  %v645_v2 = vmax.f32 %v629_v63, 0.0  ;;  %v634_v3 = vadd.f32 %v590_v0, %v1358_v22  ;;  %v582_v6 = vadd.f32 %v1403_v50, %v581_v1 }
 0x211   : > { %v907_v7 = vpop.f32.mrf.mxu1 }
 0x212   : > { %661 = vst [vmem:[%s1412_s6 + $0x8] sm:$0xff] %v645_v2  ;;  %v650_v17 = vmax.f32 %v634_v3, 0.0  ;;  %v632_v8 = vadd.f32 %v582_v6, %v1348_v18  ;;  %v593_v9 = vadd.f32 %v907_v7, %v1403_v50 }
 0x213   : > { %v584_v10 = vpop.f32.mrf.mxu1 }
 0x214   : > { %666 = vst [vmem:[%s1412_s6 + $0x30] sm:$0xff] %v650_v17  ;;  %v648_v5 = vmax.f32 %v632_v8, 0.0  ;;  %v635_v11 = vadd.f32 %v593_v9, %v1361_v23  ;;  %v585_v12 = vadd.f32 %v1403_v50, %v584_v10 }
 0x215   : > { %v910_v13 = vpop.f32.mrf.mxu1 }
 0x216   : > { %664 = vst [vmem:[%s1412_s6 + $0x20] sm:$0xff] %v648_v5  ;;  %v651_v22 = vmax.f32 %v635_v11, 0.0  ;;  %v633_v14 = vadd.f32 %v585_v12, %v1351_v19  ;;  %v606_v15 = vadd.f32 %v910_v13, %v1403_v50 }
 0x217   : > { %v597_v20 = vpop.f32.mrf.mxu1 }
 0x218   : > { %667 = vst [vmem:[%s1412_s6 + $0x38] sm:$0xff] %v651_v22  ;;  %v649_v18 = vmax.f32 %v633_v14, 0.0  ;;  %v638_v21 = vadd.f32 %v606_v15, %v1374_v28  ;;  %v598_v26 = vadd.f32 %v1403_v50, %v597_v20 }
 0x219   : > { %v911_v27 = vpop.f32.mrf.mxu1 }
 0x21a   : > { %665 = vst [vmem:[%s1412_s6 + $0x28] sm:$0xff] %v649_v18  ;;  %v654_v23 = vmax.f32 %v638_v21, 0.0  ;;  %v636_v32 = vadd.f32 %v598_v26, %v1364_v24  ;;  %v609_v33 = vadd.f32 %v911_v27, %v1403_v50 }
 0x21b   : > { %v600_v36 = vpop.f32.mrf.mxu1 }
 0x21c   : > { %670 = vst [vmem:[%s1412_s6 + $0x50] sm:$0xff] %v654_v23  ;;  %v652_v19 = vmax.f32 %v636_v32, 0.0  ;;  %v639_v37 = vadd.f32 %v609_v33, %v1377_v29  ;;  %v601_v38 = vadd.f32 %v1403_v50, %v600_v36 }
 0x21d   : > { %v914_v39 = vpop.f32.mrf.mxu1 }
 0x21e   : > { %668 = vst [vmem:[%s1412_s6 + $0x40] sm:$0xff] %v652_v19  ;;  %v655_v28 = vmax.f32 %v639_v37, 0.0  ;;  %v637_v40 = vadd.f32 %v601_v38, %v1367_v25  ;;  %v622_v41 = vadd.f32 %v914_v39, %v1403_v50 }
 0x21f   : > { %v613_v24 = vpop.f32.mrf.mxu1 }
 0x220   : > { %671 = vst [vmem:[%s1412_s6 + $0x58] sm:$0xff] %v655_v28  ;;  %v653_v43 = vmax.f32 %v637_v40, 0.0  ;;  %v642_v44 = vadd.f32 %v622_v41, %v1390_v34  ;;  %v614_v29 = vadd.f32 %v1403_v50, %v613_v24 }
 0x221   : > { %v915_v45 = vpop.f32.mrf.mxu1 }
 0x222   : > { %669 = vst [vmem:[%s1412_s6 + $0x48] sm:$0xff] %v653_v43  ;;  %v658_v46 = vmax.f32 %v642_v44, 0.0  ;;  %v640_v47 = vadd.f32 %v614_v29, %v1380_v30  ;;  %v625_v25 = vadd.f32 %v915_v45, %v1403_v50 }
 0x223   : > { %v616_v48 = vpop.f32.mrf.mxu1 }
 0x224   : > { %674 = vst [vmem:[%s1412_s6 + $0x70] sm:$0xff] %v658_v46  ;;  %v656_v49 = vmax.f32 %v640_v47, 0.0  ;;  %v643_v51 = vadd.f32 %v625_v25, %v1393_v35  ;;  %v617_v34 = vadd.f32 %v1403_v50, %v616_v48 }
 0x226   : > { %672 = vst [vmem:[%s1412_s6 + $0x60] sm:$0xff] %v656_v49  ;;  %v659_v52 = vmax.f32 %v643_v51, 0.0  ;;  %v641_v53 = vadd.f32 %v617_v34, %v1383_v31 }
 0x228   : > { %675 = vst [vmem:[%s1412_s6 + $0x78] sm:$0xff] %v659_v52  ;;  %v657_v30 = vmax.f32 %v641_v53, 0.0 }
 0x22a   : > { %673 = vst [vmem:[%s1412_s6 + $0x68] sm:$0xff] %v657_v30 }
 0x22b   : > { %1098 = shalt.err (!%p1095_p9)
}
 0x22c   : > { %s1099_s12 = scalar_lea.hbm %s1460_s27, 2048  ;;  %s1103_s23 = scalar_lea.hbm %s1511_s4, 4096 }
 0x22d   : > { %p1100_p13 = scmp.ne.s32.totalorder %s1460_s27, %s1099_s12  ;;  %p1104_p4 = scmp.lt.s32.totalorder %s1460_s27, %s1511_s4 }
 0x22e   : > { %p1105_p8 = scmp.lt.s32.totalorder %s1103_s23, %s1099_s12 }
 0x22f   : > { %p1101_p5 = pnand %p1100_p13, %p1527_p10 }
 0x230   : > { %p1106_p3 = por %p1105_p8, %p1104_p4 }
 0x231   : > { %p1102_p0 = pneg %p1101_p5 }
 0x233   : > { %p1107_p11 = pnand %p1106_p3, %p1102_p0 }
 0x235   : > { %1110 = shalt.err (!%p1107_p11)
}
 0x236   : > { %s1163_s6 = smov 128   ;;  %s1164_s7 = smov 8  }
 0x237   : > { %926 = dma.vmem_to_hbm [thread:$0]  (%p1527_p10), %s1462_s25, 2048, %s1460_s27, %s677_s28, %s1163_s6, %s1163_s6, %s1164_s7  }
 0x238 PF: > { %s705_s24 = sand.u32 1, %s1141_s15   ;;  %p1528_p1 = scmp.ne.s32.totalorder %s1517_s22, 0 }
 0x239   : > { %p1529_p2 = scmp.ge.s32.totalorder %s1153_s18, 2  ;;  %s706_s26 = scalar_lea.sflag [#allocation4], %s705_s24 }
 0x23b   : > { %p940_p6 = pnand %p1529_p2, %p1528_p1 }
 0x23d   : > { %p941_p12 = pneg %p940_p6 }
 0x23f   : > { %1136 = dma.done.wait (%p941_p12), %s706_s26, 2048  }
 0x240   : > { %1138 = vsyncadd (%p941_p12), %s706_s26, 4294965248  ;;  %p18_p7 = scmp.ge.s32.totalorder %s1262_s11, 4   ;;  %s1530_s15 = smov %s1145_s16 }
 0x241   : > { %s1531_s16 = smov %s1149_s17  ;;  %s1532_s17 = smov %s1278_s20 }
 0x242   : > { %s1533_s18 = smov %s1262_s11  ;;  %20 = sbr.rel (!%p18_p7) target bundleno = 6 (0x6), region = 89 }
 0x247   :  { %711 = vsyncpa [#allocation3], 1 }
 0x248   :  { %713 = vsyncpa [#allocation3 + $0x1], 1 }
 0x249   :  { %714 = vsyncpa [#allocation6], 1 }
 0x24a   :  { %715 = vsyncpa [#allocation4], 1 }
 0x24b   :  { %717 = vsyncpa [#allocation4 + $0x1], 1 }

</bundles_post_ra>
